<compile_context>
chip_gen: v7x
topology: tpu7x:2x2x1
jax: 0.10.0
libtpu: 0.0.40
codegen_flags: <defaults>
</compile_context>

<pallas_src>
import functools

import jax
import jax.numpy as jnp
from jax.experimental import pallas as pl
from jax.experimental.pallas import tpu as pltpu

# --- small, module-consistent hyperparameters (scaled down from n_embd=384,
#     block_size=128 for a quick synthetic run) ---
N_EMBD = 32       # embedding dim C (num_heads * head_size)
NUM_HEADS = 4
HEAD_SIZE = N_EMBD // NUM_HEADS
BATCH = 2
SEQ = 8           # T <= block_size, causal mask applied over T x T


def _mha_kernel(x_ref, wqkv_ref, wp_ref, bp_ref, o_ref, *, num_heads):
    """One grid step processes one batch element.

    x_ref    : (1, T, C)  VMEM
    wqkv_ref : (C, 3C)    VMEM   columns = [Wq heads (pre-scaled) | Wk | Wv]
    wp_ref   : (C, C)     VMEM   projection weight (in_dim, out_dim)
    bp_ref   : (1, C)     VMEM   projection bias
    o_ref    : (1, T, C)  VMEM
    """
    _, T, C = x_ref.shape
    H = num_heads
    hs = C // H

    x = x_ref[0]                                               # (T, C)

    # --- fused QKV: one MXU matmul, f32 accumulation (scale already folded
    #     into the Q columns of wqkv in the wrapper) ---
    qkv = jnp.dot(x, wqkv_ref[...],
                  preferred_element_type=jnp.float32)          # (T, 3C) f32

    q = qkv[:, :C].reshape(T, H, hs)
    k = qkv[:, C:2 * C].reshape(T, H, hs)
    v = qkv[:, 2 * C:].reshape(T, H, hs)

    # --- scores for all heads at once (batched over the head axis) ---
    wei = jnp.einsum('nhd,mhd->hnm', q, k,
                     preferred_element_type=jnp.float32)       # (H, T, T) f32

    # --- causal mask generated in-kernel (no HBM bias traffic) ---
    row = jax.lax.broadcasted_iota(jnp.int32, (T, T), 0)
    col = jax.lax.broadcasted_iota(jnp.int32, (T, T), 1)
    wei = jnp.where((col <= row)[None], wei, jnp.float32(-1e30))

    # --- numerically-stable softmax in f32 (exact divide for parity) ---
    m = jnp.max(wei, axis=-1, keepdims=True)
    p = jnp.exp(wei - m)
    attn = p / jnp.sum(p, axis=-1, keepdims=True)

    # --- weighted sum over values; heads land contiguously (no concatenate) ---
    ctx = jnp.einsum('hnm,mhd->nhd', attn, v,
                     preferred_element_type=jnp.float32)       # (T, H, hs) f32
    ctx = ctx.reshape(T, C)

    # --- output projection ---
    out = jnp.dot(ctx.astype(x.dtype), wp_ref[...],
                  preferred_element_type=jnp.float32)
    out = out + bp_ref[...].astype(jnp.float32)
    o_ref[0] = out.astype(o_ref.dtype)


def multi_head_attention(x, wq, wk, wv, wp, bp):
    """x: (B, T, C); wq/wk/wv: (H, C, hs); wp: (C, C); bp: (C,)."""
    B, T, C = x.shape
    H, _, hs = wq.shape

    # Fuse the per-head QKV weights into one (C, 3C) matrix:
    #   columns [h*hs:(h+1)*hs] of the Q block equal wq[h], etc.
    # The PyTorch module scales scores by n_embd**-0.5; fold it into the Q
    # weight columns here (one-time, constant-folded by XLA).
    scale = C ** (-0.5)
    wq2 = jnp.transpose(wq, (1, 0, 2)).reshape(C, H * hs) * scale
    wk2 = jnp.transpose(wk, (1, 0, 2)).reshape(C, H * hs)
    wv2 = jnp.transpose(wv, (1, 0, 2)).reshape(C, H * hs)
    wqkv = jnp.concatenate([wq2, wk2, wv2], axis=-1)           # (C, 3C)

    bp2 = bp.reshape(1, C)

    kernel = functools.partial(_mha_kernel, num_heads=H)

    out = pl.pallas_call(
        kernel,
        out_shape=jax.ShapeDtypeStruct((B, T, C), x.dtype),
        grid_spec=pltpu.PrefetchScalarGridSpec(
            num_scalar_prefetch=0,
            grid=(B,),                                         # one batch elem per step
            in_specs=[
                pl.BlockSpec((1, T, C), lambda b: (b, 0, 0)),  # x[b]
                pl.BlockSpec((C, 3 * C), lambda b: (0, 0)),    # fused Wqkv (resident)
                pl.BlockSpec((C, C), lambda b: (0, 0)),        # Wproj (resident)
                pl.BlockSpec((1, C), lambda b: (0, 0)),        # bproj (resident)
            ],
            out_specs=pl.BlockSpec((1, T, C), lambda b: (b, 0, 0)),
        ),
        compiler_params=pltpu.CompilerParams(
            dimension_semantics=("parallel",)),                # megacore-shardable
    )(x, wqkv, wp, bp2)

    return out


def _reference(x, wq, wk, wv, wp, bp):
    """Pure-JAX reference mirroring the PyTorch forward (eval mode)."""
    B, T, C = x.shape
    scale = C ** (-0.5)
    causal = jnp.tril(jnp.ones((T, T), dtype=bool))
    outs = []
    for h in range(wq.shape[0]):
        q = x @ wq[h]
        k = x @ wk[h]
        v = x @ wv[h]
        wei = (q @ jnp.swapaxes(k, -1, -2)) * scale
        wei = jnp.where(causal[None], wei, -jnp.inf)
        wei = jax.nn.softmax(wei, axis=-1)
        outs.append(wei @ v)
    cat = jnp.concatenate(outs, axis=-1)
    return cat @ wp + bp


if __name__ == "__main__":
    key = jax.random.PRNGKey(0)
    kx, kq, kk, kv, kp, kb = jax.random.split(key, 6)

    x = jax.random.normal(kx, (BATCH, SEQ, N_EMBD), dtype=jnp.float32)

    # deterministic parameter init (synthetic; shapes follow nn.Linear in the module)
    std = 1.0 / (N_EMBD ** 0.5)
    wq = jax.random.normal(kq, (NUM_HEADS, N_EMBD, HEAD_SIZE), jnp.float32) * std
    wk = jax.random.normal(kk, (NUM_HEADS, N_EMBD, HEAD_SIZE), jnp.float32) * std
    wv = jax.random.normal(kv, (NUM_HEADS, N_EMBD, HEAD_SIZE), jnp.float32) * std
    wp = jax.random.normal(kp, (N_EMBD, N_EMBD), jnp.float32) * std
    bp = jax.random.normal(kb, (N_EMBD,), jnp.float32) * 0.01

    out = multi_head_attention(x, wq, wk, wv, wp, bp)
    out = jax.block_until_ready(out)

    ref = _reference(x, wq, wk, wv, wp, bp)
    assert out.shape == (BATCH, SEQ, N_EMBD)
    assert jnp.allclose(out, ref, atol=1e-4, rtol=1e-4), "mismatch vs reference"

    print("KERNEL_OK")
</pallas_src>

<mosaic_0001>
module attributes {stable_mosaic.version = 11 : i64} {
  func.func @_mha_kernel(%arg0: i32, %arg1: memref<1x8x32xf32, #tpu.memory_space<vmem>>, %arg2: memref<32x96xf32, #tpu.memory_space<vmem>>, %arg3: memref<32x32xf32, #tpu.memory_space<vmem>>, %arg4: memref<1x32xf32, #tpu.memory_space<vmem>>, %arg5: memref<1x8x32xf32, #tpu.memory_space<vmem>>) attributes {dimension_semantics = [#tpu.dimension_semantics<parallel>], iteration_bounds = array<i64: 2>, scalar_prefetch = 0 : i64, scratch_operands = 0 : i64, tpu.core_type = #tpu.core_type<tc>, window_params = [{transform_indices = @transform_0, window_bounds = array<i64: 1, 8, 32>}, {pipeline_mode = #tpu.pipeline_mode<synchronous>, transform_indices = @transform_1, window_bounds = array<i64: 32, 96>}, {pipeline_mode = #tpu.pipeline_mode<synchronous>, transform_indices = @transform_2, window_bounds = array<i64: 32, 32>}, {pipeline_mode = #tpu.pipeline_mode<synchronous>, transform_indices = @transform_3, window_bounds = array<i64: 1, 32>}, {transform_indices = @transform_4, window_bounds = array<i64: 1, 8, 32>}]} {
    %c0 = arith.constant 0 : index
    %c0_0 = arith.constant 0 : index
    %c0_1 = arith.constant 0 : index
    %0 = vector.load %arg1[%c0, %c0_0, %c0_1] : memref<1x8x32xf32, #tpu.memory_space<vmem>>, vector<1x8x32xf32>
    %1 = vector.shape_cast %0 : vector<1x8x32xf32> to vector<8x32xf32>
    %c0_2 = arith.constant 0 : index
    %c0_3 = arith.constant 0 : index
    %2 = vector.load %arg2[%c0_2, %c0_3] : memref<32x96xf32, #tpu.memory_space<vmem>>, vector<32x96xf32>
    %cst = arith.constant dense<0.000000e+00> : vector<8x96xf32>
    %3 = tpu.matmul %1, %2, %cst {dimension_numbers = #tpu.dot_dimension_numbers<[1], [0], [0], [1], [0, 0, 1, 1], [], []>} : vector<8x32xf32>, vector<32x96xf32>, vector<8x96xf32> -> vector<8x96xf32>
    %4 = vector.extract_strided_slice %3 {offsets = [0, 0], sizes = [8, 32], strides = [1, 1]} : vector<8x96xf32> to vector<8x32xf32>
    %5 = vector.shape_cast %4 : vector<8x32xf32> to vector<8x4x8xf32>
    %6 = vector.extract_strided_slice %3 {offsets = [0, 32], sizes = [8, 32], strides = [1, 1]} : vector<8x96xf32> to vector<8x32xf32>
    %7 = vector.shape_cast %6 : vector<8x32xf32> to vector<8x4x8xf32>
    %8 = vector.extract_strided_slice %3 {offsets = [0, 64], sizes = [8, 32], strides = [1, 1]} : vector<8x96xf32> to vector<8x32xf32>
    %9 = vector.shape_cast %8 : vector<8x32xf32> to vector<8x4x8xf32>
    "tpu.trace_start"() <{level = 10 : i32, message = "nhd,mhd->hnm"}> : () -> ()
    %cst_4 = arith.constant dense<0.000000e+00> : vector<4x8x8xf32>
    %10 = tpu.matmul %5, %7, %cst_4 {dimension_numbers = #tpu.dot_dimension_numbers<[2], [2], [0], [0], [0, 1, 0, 0, 1, 0], [1], [1]>} : vector<8x4x8xf32>, vector<8x4x8xf32>, vector<4x8x8xf32> -> vector<4x8x8xf32>
    "tpu.trace_stop"() : () -> ()
    %11 = tpu.iota {dimensions = array<i32: 0>} : vector<8x8xi32>
    %12 = tpu.iota {dimensions = array<i32: 1>} : vector<8x8xi32>
    %13 = arith.cmpi sle, %12, %11 : vector<8x8xi32>
    %14 = vector.shape_cast %13 : vector<8x8xi1> to vector<1x8x8xi1>
    %cst_5 = arith.constant -1.000000e+30 : f32
    %15 = vector.shape_cast %14 : vector<1x8x8xi1> to vector<1x8x8xi1>
    %16 = vector.broadcast %15 : vector<1x8x8xi1> to vector<4x8x8xi1>
    %17 = vector.broadcast %cst_5 : f32 to vector<4x8x8xf32>
    %18 = arith.select %16, %10, %17 : vector<4x8x8xi1>, vector<4x8x8xf32>
    %cst_6 = arith.constant dense<0xFF800000> : vector<4x8xf32>
    %19 = vector.multi_reduction <maximumf>, %18, %cst_6 [2] : vector<4x8x8xf32> to vector<4x8xf32>
    %20 = vector.shape_cast %19 : vector<4x8xf32> to vector<4x8x1xf32>
    %21 = vector.broadcast %20 : vector<4x8x1xf32> to vector<4x8x8xf32>
    %22 = arith.subf %18, %21 : vector<4x8x8xf32>
    %23 = math.exp %22 : vector<4x8x8xf32>
    %cst_7 = arith.constant dense<0.000000e+00> : vector<4x8xf32>
    %24 = vector.multi_reduction <add>, %23, %cst_7 [2] : vector<4x8x8xf32> to vector<4x8xf32>
    %25 = vector.shape_cast %24 : vector<4x8xf32> to vector<4x8x1xf32>
    %26 = vector.broadcast %25 : vector<4x8x1xf32> to vector<4x8x8xf32>
    %27 = arith.divf %23, %26 : vector<4x8x8xf32>
    "tpu.trace_start"() <{level = 10 : i32, message = "hnm,mhd->nhd"}> : () -> ()
    %cst_8 = arith.constant dense<0.000000e+00> : vector<4x8x8xf32>
    %28 = tpu.matmul %9, %27, %cst_8 {dimension_numbers = #tpu.dot_dimension_numbers<[0], [2], [2], [1], [0, 1, 0, 2, 1, 1], [1], [0]>} : vector<8x4x8xf32>, vector<4x8x8xf32>, vector<4x8x8xf32> -> vector<4x8x8xf32>
    %29 = tpu.transpose %28, [2, 0, 1] : vector<4x8x8xf32> -> vector<8x4x8xf32>
    "tpu.trace_stop"() : () -> ()
    %30 = vector.shape_cast %29 : vector<8x4x8xf32> to vector<8x32xf32>
    %c0_9 = arith.constant 0 : index
    %c0_10 = arith.constant 0 : index
    %31 = vector.load %arg3[%c0_9, %c0_10] : memref<32x32xf32, #tpu.memory_space<vmem>>, vector<32x32xf32>
    %cst_11 = arith.constant dense<0.000000e+00> : vector<8x32xf32>
    %32 = tpu.matmul %30, %31, %cst_11 {dimension_numbers = #tpu.dot_dimension_numbers<[1], [0], [0], [1], [0, 0, 1, 1], [], []>} : vector<8x32xf32>, vector<32x32xf32>, vector<8x32xf32> -> vector<8x32xf32>
    %c0_12 = arith.constant 0 : index
    %c0_13 = arith.constant 0 : index
    %33 = vector.load %arg4[%c0_12, %c0_13] : memref<1x32xf32, #tpu.memory_space<vmem>>, vector<1x32xf32>
    %34 = vector.broadcast %33 : vector<1x32xf32> to vector<8x32xf32>
    %35 = arith.addf %32, %34 : vector<8x32xf32>
    %c0_14 = arith.constant 0 : index
    %c0_15 = arith.constant 0 : index
    %c0_16 = arith.constant 0 : index
    %36 = vector.load %arg5[%c0_14, %c0_15, %c0_16] : memref<1x8x32xf32, #tpu.memory_space<vmem>>, vector<1x8x32xf32>
    %37 = vector.shape_cast %36 : vector<1x8x32xf32> to vector<8x32xf32>
    %38 = vector.shape_cast %35 : vector<8x32xf32> to vector<1x8x32xf32>
    tpu.vector_store %arg5[%c0_14, %c0_15, %c0_16], %38 {strides = array<i32>} : memref<1x8x32xf32, #tpu.memory_space<vmem>>, vector<1x8x32xf32>,
    return
  }
  func.func @transform_0(%arg0: i32) -> (i32, i32, i32) {
    %c0_i32 = arith.constant 0 : i32
    %c0_i32_0 = arith.constant 0 : i32
    %c0_i32_1 = arith.constant 0 : i32
    return %arg0, %c0_i32, %c0_i32_0 : i32, i32, i32
  }
  func.func @transform_1(%arg0: i32) -> (i32, i32) {
    %c0_i32 = arith.constant 0 : i32
    %c0_i32_0 = arith.constant 0 : i32
    %c0_i32_1 = arith.constant 0 : i32
    return %c0_i32, %c0_i32_0 : i32, i32
  }
  func.func @transform_2(%arg0: i32) -> (i32, i32) {
    %c0_i32 = arith.constant 0 : i32
    %c0_i32_0 = arith.constant 0 : i32
    %c0_i32_1 = arith.constant 0 : i32
    return %c0_i32, %c0_i32_0 : i32, i32
  }
  func.func @transform_3(%arg0: i32) -> (i32, i32) {
    %c0_i32 = arith.constant 0 : i32
    %c0_i32_0 = arith.constant 0 : i32
    %c0_i32_1 = arith.constant 0 : i32
    return %c0_i32, %c0_i32_0 : i32, i32
  }
  func.func @transform_4(%arg0: i32) -> (i32, i32, i32) {
    %c0_i32 = arith.constant 0 : i32
    %c0_i32_0 = arith.constant 0 : i32
    %c0_i32_1 = arith.constant 0 : i32
    return %arg0, %c0_i32, %c0_i32_0 : i32, i32, i32
  }
}

</mosaic_0001>

<bundles_post_ra>
// kernel: tpu_custom_call.1
= control target key start
LH: loop header
LB: loop body
LE: loop exit
PB: predicated region body
PF: predicated region fallthrough
CT: control target
= control target key end

     0   :  { %9 = vsyncpa [#allocation3], 0  ;;  %s2471_s0 = inlined_call_operand.hbm [shape: f32[2,8,32], index: 0, kind: input, shape index: {}]   ;;  %s2472_s1 = inlined_call_operand.hbm [shape: f32[32,96], index: 1, kind: input, shape index: {}]   ;;  %s2473_s2 = inlined_call_operand.hbm [shape: f32[32,32], index: 2, kind: input, shape index: {}]   ;;  %s2474_s3 = inlined_call_operand.vmem [shape: f32[1,32], index: 3, kind: input, shape index: {}]   ;;  %s2475_s4 = inlined_call_operand.hbm [shape: f32[2,8,32], index: 4, kind: output, shape index: {}]  }
   0x1   :  { %11 = vsyncpa [#allocation3 + $0x1], 0 }
   0x2   :  { %12 = vsyncpa [#allocation6], 0 }
   0x3   :  { %13 = vsyncpa [#allocation4], 0 }
   0x4   :  { %15 = vsyncpa [#allocation4 + $0x1], 0  ;;  %s2158_s15 = smov 0   ;;  %s2160_s16 = smov 0  }
   0x5   :  { %s2162_s17 = smov 0   ;;  %s2164_s18 = smov 0  }
   0x6 LB: > { %s2179_s19 = sadd.s32 4294967295, %s2112_s18   ;;  %s1725_s20 = sadd.s32 4294967294, %s2112_s18   ;;  %s2112_s18 = sphi %s2164_s18, %s2495_s18   ;;  %s2108_s17 = sphi %s2162_s17, %s2494_s17   ;;  %s2104_s16 = sphi %s2160_s16, %s2493_s16   ;;  %s2100_s15 = sphi %s2158_s15, %s2492_s15  }
   0x7   : > { %p41_p0 = scmp.ne.s32.totalorder %s2104_s16, %s2100_s15  ;;  %p2476_p1 = scmp.eq.s32.totalorder %s2179_s19, 0 }
   0x8   : > { %p134_p3 = scmp.eq.s32.totalorder %s1725_s20, 1  ;;  %p1726_p5 = scmp.ge.s32.totalorder %s2112_s18, 1 }
   0x9   : > { %p2188_p4 = por %p2476_p1, %p41_p0  ;;  %p141_p7 = scmp.lt.s32.totalorder %s2112_s18, 3 }
   0xa   : > { %p2193_p6 = por %p134_p3, %p41_p0  ;;  %s2114_s24 = smov [#allocation5]  }
   0xb   : > { %s2479_s21 = scalar_select %p2188_p4, 1, 0 }
   0xc   : > { %s2480_s22 = scalar_select %p2193_p6, 1, 0 }
   0xd   : > { %p2198_p8 = pnand %p1726_p5, %p141_p7  ;;  %s153_s25 = sshll.u32 %s2114_s24, 4  ;;  %s2202_s25 = int_to_ptr.vmem [resolvable:$true] %s153_s25 }
   0xe   : > { %s2115_s27 = smov [#allocation7]   ;;  %s1956_s5 = scalar_lea.hbm %s2472_s1, 512 }
   0xf   : > { %p1870_p9 = pneg %p2198_p8  ;;  %s166_s28 = sshll.u32 %s2115_s27, 4  ;;  %s2213_s28 = int_to_ptr.vmem [resolvable:$true] %s166_s28 }
  0x10   : > { %p1957_p12 = scmp.ne.s32.totalorder %s2472_s1, %s1956_s5  ;;  %p1963_p5 = scmp.lt.u32.totalorder %s1956_s5, %s2472_s1 }
  0x11   : > { %p2209_p11 = pnand %p1870_p9, %p2476_p1 }
  0x13   : > { %p1958_p13 = pneg %p2209_p11 }
  0x15   : > { %p1959_p0 = pnand %p1958_p13, %p1957_p12 }
  0x17   : > { %p1960_p3 = pneg %p1959_p0 }
  0x19   : > { %p1965_p7 = pnand %p1963_p5, %p1960_p3 }
  0x1b   : > { %1968 = shalt.err (!%p1965_p7)
}
  0x1c   : > { %s1969_s10 = scalar_lea.vmem %s2202_s25, 512  ;;  %p1977_p2 = scmp.lt.s32.totalorder %s2202_s25, %s2202_s25 }
  0x1d   : > { %p1970_p9 = scmp.ne.s32.totalorder %s2202_s25, %s1969_s10  ;;  %p1978_p12 = scmp.lt.s32.totalorder %s1969_s10, %s1969_s10 }
  0x1f   : > { %p1972_p10 = pnand %p1970_p9, %p1958_p13  ;;  %p1979_p0 = por %p1978_p12, %p1977_p2 }
  0x21   : > { %p1973_p1 = pneg %p1972_p10 }
  0x23   : > { %p1980_p6 = pnand %p1979_p0, %p1973_p1 }
  0x25   : > { %1983 = shalt.err (!%p1980_p6)
}
  0x26   : > { %s2116_s11 = smov 128   ;;  %s2117_s12 = smov 8  }
  0x27   : > { %1873 = dma.hbm_to_vmem [thread:$0]  (!%p2209_p11), %s2472_s1, 512, %s2202_s25, [#allocation6], %s2116_s11, %s2116_s11, %s2117_s12  }
  0x28   : > { %s1984_s27 = scalar_lea.hbm %s2473_s2, 512 }
  0x29   : > { %p1985_p2 = scmp.ne.s32.totalorder %s2473_s2, %s1984_s27  ;;  %p1991_p10 = scmp.lt.u32.totalorder %s1984_s27, %s2473_s2 }
  0x2b   : > { %p1987_p1 = pnand %p1985_p2, %p1958_p13 }
  0x2d   : > { %p1988_p6 = pneg %p1987_p1 }
  0x2f   : > { %p1993_p3 = pnand %p1991_p10, %p1988_p6 }
  0x31   : > { %1996 = shalt.err (!%p1993_p3)
}
  0x32   : > { %s1997_s25 = scalar_lea.vmem %s2213_s28, 512  ;;  %p2005_p12 = scmp.lt.s32.totalorder %s2213_s28, %s2213_s28 }
  0x33   : > { %p1998_p5 = scmp.ne.s32.totalorder %s2213_s28, %s1997_s25  ;;  %p2006_p0 = scmp.lt.s32.totalorder %s1997_s25, %s1997_s25 }
  0x35   : > { %p2000_p7 = pnand %p1998_p5, %p1958_p13  ;;  %p2007_p2 = por %p2006_p0, %p2005_p12 }
  0x37   : > { %p2001_p9 = pneg %p2000_p7 }
  0x39   : > { %p2008_p1 = pnand %p2007_p2, %p2001_p9 }
  0x3b   : > { %2011 = shalt.err (!%p2008_p1)
}
  0x3c   : > { %1876 = dma.hbm_to_vmem [thread:$0]  (!%p2209_p11), %s2473_s2, 512, %s2213_s28, [#allocation6], %s2116_s11, %s2116_s11, %s2117_s12  }
  0x3d   : > { %s2268_s9 = sadd.s32 1, %s2112_s18   ;;  %s28_s26 = sadd.s32 1, %s2108_s17 }
  0x3e   : > { %s25_s10 = ssub.s32 %s2112_s18, %s2268_s9  ;;  %p35_p13 = scmp.ne.s32.totalorder %s2108_s17, %s2104_s16 }
  0x3f   : > { %p26_p6 = scmp.eq.s32.totalorder %s25_s10, 0  ;;  %p36_p10 = scmp.eq.s32.totalorder %s2112_s18, 0 }
  0x40   : > { %p2483_p3 = scmp.eq.s32.totalorder %s2179_s19, 1  ;;  %p1887_p7 = scmp.lt.s32.totalorder %s2112_s18, 2 }
  0x41   : > { %s2284_s14 = scalar_select %p26_p6, %s2108_s17, %s28_s26  }
  0x42   : > { %p2278_p5 = por %p2483_p3, %p35_p13  ;;  %p37_p9 = por %p36_p10, %p35_p13 }
  0x43   : > { %s183_s20 = sand.u32 1, %s2108_s17   ;;  %s1731_s28 = sshll.u32 %s2112_s18, 7 }
  0x44   : > { %s2484_s13 = scalar_select %p2278_p5, 1, 0 }
  0x45   : > { %s1730_s24 = sshll.u32 %s183_s20, 3  ;;  %s2291_s27 = scalar_lea.hbm %s2471_s0, %s1731_s28 }
  0x46   : > { %s187_s29 = scalar_lea.vmem [#allocation2], %s1730_s24  ;;  %p2295_p11 = pnand %p1887_p7, %p37_p9 }
  0x47   : > { %s194_s30 = sshll.u32 %s187_s29, 4  ;;  %s184_s6 = scalar_lea.sflag [#allocation3], %s183_s20  ;;  %s2293_s30 = int_to_ptr.vmem [resolvable:$true] %s194_s30 }
  0x48   : > { %s2012_s25 = scalar_lea.hbm %s2291_s27, 128  ;;  %p2014_p0 = pneg %p2295_p11 }
  0x49   : > { %p2013_p12 = scmp.ne.s32.totalorder %s2291_s27, %s2012_s25  ;;  %s2017_s26 = scalar_lea.hbm %s2471_s0, 256 }
  0x4a   : > { %p2018_p13 = scmp.lt.u32.totalorder %s2291_s27, %s2471_s0  ;;  %p2019_p6 = scmp.lt.u32.totalorder %s2017_s26, %s2012_s25 }
  0x4b   : > { %p2015_p2 = pnand %p2014_p0, %p2013_p12  ;;  %p2021_p3 = scmp.lt.u32.totalorder %s2012_s25, %s2291_s27 }
  0x4c   : > { %p2020_p10 = por %p2019_p6, %p2018_p13 }
  0x4d   : > { %p2016_p1 = pneg %p2015_p2 }
  0x4e   : > { %p2022_p7 = por %p2021_p3, %p2020_p10 }
  0x50   : > { %p2023_p9 = pnand %p2022_p7, %p2016_p1 }
  0x52   : > { %2026 = shalt.err (!%p2023_p9)
}
  0x53   : > { %s2027_s20 = scalar_lea.vmem %s2293_s30, 128  ;;  %s2118_s28 = smov [#allocation2]  }
  0x54   : > { %p2028_p12 = scmp.ne.s32.totalorder %s2293_s30, %s2027_s20  ;;  %s2032_s11 = sshll.u32 %s2118_s28, 4  ;;  %s2033_s11 = int_to_ptr.vmem [resolvable:$false] %s2032_s11 }
  0x55   : > { %s2034_s12 = scalar_lea.vmem %s2033_s11, 256  ;;  %p2035_p4 = scmp.lt.s32.totalorder %s2293_s30, %s2033_s11 }
  0x56   : > { %p2030_p2 = pnand %p2028_p12, %p2014_p0  ;;  %p2036_p13 = scmp.lt.s32.totalorder %s2034_s12, %s2027_s20 }
  0x58   : > { %p2031_p5 = pneg %p2030_p2  ;;  %p2037_p6 = por %p2036_p13, %p2035_p4 }
  0x5a   : > { %p2038_p10 = pnand %p2037_p6, %p2031_p5 }
  0x5c   : > { %2041 = shalt.err (!%p2038_p10)
}
  0x5d   : > { %1880 = dma.hbm_to_vmem [thread:$0]  (!%p2295_p11), %s2291_s27, 128, %s2293_s30, %s184_s6  }
  0x5e   : > { %203 = sbr.rel (%p2198_p8) target bundleno = 1958 (0x7a6), region = 36  ;;  %s2327_s29 = sand.u32 (!%p2198_p8), 1, %s2104_s16  }
  0x5f   : > { %s1733_s25 = sshll.u32 (!%p2198_p8), %s2327_s29, 3  ;;  %s206_s7 = scalar_lea.sflag (!%p2198_p8), [#allocation3], %s2327_s29 }
  0x60   : > { %s209_s8 = scalar_lea.vmem (!%p2198_p8), [#allocation2], %s1733_s25  ;;  %p2486_p4 = scmp.ne.s32.totalorder (!%p2198_p8), %s2479_s21, 0 }
  0x65   : > { %2087 = dma.done.wait (%p2486_p4), %s206_s7, 128  }
  0x66   : > { %2089 = vsyncadd (%p2486_p4), %s206_s7, 4294967168  ;;  %p2487_p5 = scmp.eq.s32.totalorder %s2179_s19, 0 }
  0x68   : > { %2091 = dma.done.wait (%p2487_p5), [#allocation6], 1024   ;;  %p2488_p8 = pmov %p2487_p5 }
  0x69   : > { %v2119_v0 = vmov 0.0|0.0   ;;  %vm2120_vm0 = vmmov 0   ;;  %v2121_v1 = vmov 0.0   ;;  %v243_v2 = vld [vmem:[#allocation5] sm:$0xff]  ;;  %v244_v3 = vld [vmem:[#allocation5 + $0x8] sm:$0xff]  ;;  %v245_v4 = vld [vmem:[#allocation5 + $0x10] sm:$0xff]  ;;  %v757_v22 = vlaneseq }
  0x6a   : > { %2093 = vsyncadd (%p2488_p8), [#allocation6], 4294966272  ;;  %1846 = vmatprep.subr.bf16.mxu0 %v2119_v0  ;;  %1792 = vmatprep.mubr.msk.f32.mxu0 %vm2120_vm0, %v2121_v1  ;;  %v1847_v5 = vpack.c.bf16 %v244_v3, %v243_v2  ;;  %v246_v6 = vld [vmem:[#allocation5 + $0x18] sm:$0xff]  ;;  %vm247_vm1 = vcmask 261120   ;;  %s2122_s21 = smov 104   ;;  %s2123_s23 = smov 120  }
  0x6b   : > { %1800 = vmatprep.subr.mxu1 %v2121_v1  ;;  %1802 = vmatprep.mubr.msk.f32.mxu1 %vm2120_vm0, %v2121_v1  ;;  %v1850_v7 = vpack.c.bf16 %v246_v6, %v245_v4  ;;  %v242_v8 = vld [vmem:[%s209_s8] sm:$0xff]  ;;  %s2124_s27 = smov 96   ;;  %s2125_s30 = smov 112   ;;  %vm468_vm2 = vcmask 64512   ;;  %v2375_v23 = vshrl.u32 %v757_v22, 7  ;;  %v760_v24 = vand.u32 127, %v757_v22 }
  0x6c   : > { %1848 = vmatpush3.bf16.msra.mxu0 %v1847_v5  ;;  %s2126_s5 = smov 64   ;;  %s2129_s6 = smov 16   ;;  %vm1533_vm4 = vcmask 130048   ;;  %vm1535_vm5 = vcmask 195584  }
  0x6d   : > { %1849 = vmatprep.subr.bf16.mxu0 %v2119_v0  ;;  %vm761_vm3 = vcmp.le.s32.totalorder %v760_v24, %v2375_v23  ;;  %s2130_s26 = smov 8   ;;  %s2131_s10 = smov 24  }
  0x6e   : > { %s1755_s28 = sshll.u32 %s2179_s19, 7  ;;  %s241_s11 = scalar_lea.vmem [#allocation8], %s1733_s25 }
  0x6f   : > { %s1636_s12 = sshll.u32 %s241_s11, 4  ;;  %p2489_p0 = scmp.ne.s32.totalorder %s2484_s13, 0  ;;  %s2428_s12 = int_to_ptr.vmem [resolvable:$true] %s1636_s12 }
  0x70   : > { %1851 = vmatpush3.bf16.msra.mxu0 %v1850_v7  ;;  %s2042_s19 = scalar_lea.vmem %s2428_s12, 128  ;;  %s2132_s25 = smov [#allocation8]  }
  0x71   : > { %1795 = vmatprep.subr.mxu0 %v2121_v1  ;;  %p2043_p11 = scmp.ne.s32.totalorder %s2428_s12, %s2042_s19 }
  0x73   : > { %1793 = vmatmul.mubr.msk.f32.vlgmr.msra.gmra.mrb[0].mxu0 %vm247_vm1, %v242_v8  ;;  %p2044_p1 = pnand %p2043_p11, %p2489_p0 }
  0x74   : > { %1797 = vmatprep.mubr.msk.f32.mxu0 %vm2120_vm0, %v2121_v1 }
  0x75   : > { %p2045_p3 = pneg %p2044_p1 }
 0x146   : > { %v2352_v9 = vpop.f32.mrb[0].mxu0 }
 0x147   : > { %326 = vrot.lane.b32.xlu1 %v2352_v9, %s2122_s21  ;;  %322 = vrot.lane.b32.xlu0 %v2352_v9, %s2123_s23  ;;  %v1794_v10 = vpop.f32.mrb[1].mxu0  ;;  %s2426_s21 = scalar_lea.hbm %s2475_s4, %s1755_s28  ;;  %s1623_s23 = scalar_lea.sflag [#allocation4], %s2327_s29 }
 0x14b   : > { %328 = vrot.lane.b32.xlu1 %v2352_v9, %s2124_s27  ;;  %324 = vrot.lane.b32.xlu0 %v2352_v9, %s2125_s30 }
 0x1b9   : > { %v323_v11 = vpop.permute.xlu0 %322  ;;  %v327_v12 = vpop.permute.xlu1 %326 }
 0x1ba   : > { %330 = vrot.lane.b32.xlu0 %v323_v11, %s2124_s27 }
 0x1bd   : > { %v325_v13 = vpop.permute.xlu0 %324  ;;  %v329_v14 = vpop.permute.xlu1 %328 }
 0x1be   : > { %334 = vrot.lane.b32.xlu0 %v327_v12, %s2124_s27  ;;  %332 = vrot.lane.b32.xlu1 %v325_v13, %s2124_s27  ;;  %s2046_s27 = sshll.u32 %s2132_s25, 4  ;;  %s2047_s27 = int_to_ptr.vmem [resolvable:$false] %s2046_s27 }
 0x1bf   : > { %s2048_s30 = scalar_lea.vmem %s2047_s27, 256  ;;  %p2049_p7 = scmp.lt.s32.totalorder %s2428_s12, %s2047_s27 }
 0x1c0   : > { %p2050_p9 = scmp.lt.s32.totalorder %s2048_s30, %s2042_s19 }
 0x1c2   : > { %p2051_p12 = por %p2050_p9, %p2049_p7 }
 0x1c4   : > { %p2052_p2 = pnand %p2051_p12, %p2045_p3 }
 0x1e7   : > { %340 = vxpose.xlu1.b32.start.end [1/1] (short) (narrow) %v329_v14, 8 }
 0x22c   : > { %v331_v15 = vpop.permute.xlu0 %330 }
 0x22d   : > { %372 = vxpose.xlu0.b32.start.end [1/1] (short) (narrow) %v331_v15, 8 }
 0x230   : > { %v333_v16 = vpop.permute.xlu1 %332  ;;  %v335_v17 = vpop.permute.xlu0 %334 }
 0x231   : > { %404 = vxpose.xlu0.b32.start.end [1/1] (short) (narrow) %v333_v16, 8 }
 0x235   : > { %436 = vxpose.xlu0.b32.start.end [1/1] (short) (narrow) %v335_v17, 8 }
 0x267   : > { %v356_v18 = vpop.trf.xlu1 }
 0x268   : > { %1796 = vmatpush3.msra.mxu0 %v356_v18 }
 0x269   : > { %1798 = vmatmul.mubr.msk.f32.vlgmr.msra.gmra.mrb[2].mxu0 %vm468_vm2, %v2352_v9  ;;  %1810 = vmatprep.subr.mxu0 %v2121_v1 }
 0x26a   : > { %1812 = vmatprep.mubr.msk.f32.mxu0 %vm2120_vm0, %v2121_v1 }
 0x2ad   : > { %v388_v19 = vpop.trf.xlu0 }
 0x2ae   : > { %1801 = vmatpush3.msra.mxu1 %v388_v19 }
 0x2af   : > { %1803 = vmatmul.mubr.msk.f32.vlgmr.msra.gmra.mrb[0].mxu1 %vm468_vm2, %v323_v11  ;;  %1805 = vmatprep.subr.mxu1 %v2121_v1 }
 0x2b0   : > { %1807 = vmatprep.mubr.msk.f32.mxu1 %vm2120_vm0, %v2121_v1 }
 0x2b1   : > { %v420_v20 = vpop.trf.xlu0 }
 0x2b2   : > { %1806 = vmatpush3.msra.mxu1 %v420_v20 }
 0x2b3   : > { %1808 = vmatmul.mubr.msk.f32.vlgmr.msra.gmra.mrb[2].mxu1 %vm468_vm2, %v325_v13  ;;  %1815 = vmatprep.subr.mxu1 %v2121_v1 }
 0x2b4   : > { %1817 = vmatprep.mubr.msk.f32.mxu1 %vm2120_vm0, %v2121_v1 }
 0x2b5   : > { %v452_v21 = vpop.trf.xlu0 }
 0x2b6   : > { %1811 = vmatpush3.msra.mxu0 %v452_v21 }
 0x2b7   : > { %1813 = vmatmul.mubr.msk.f32.vlgmr.msra.gmra.mrb[4].mxu0 %vm468_vm2, %v327_v12  ;;  %1820 = vmatprep.subr.mxu0 %v2121_v1 }
 0x2b8   : > { %1822 = vmatprep.mubr.msk.f32.mxu0 %vm2120_vm0, %v2121_v1 }
 0x33c   : > { %v537_v25 = vpop.f32.mrb[2].mxu0 }
 0x33d   : > { %v764_v26 = vsel %vm761_vm3, %v537_v25, -1e+30  ;;  %v1799_v27 = vpop.f32.mrb[3].mxu0 }
 0x33e   : > { %v768_v28 = vsel %vm468_vm2, %v764_v26, -inf }
 0x33f   : > { %769 = vmax.xlane.f32.xlu1 %v768_v28  ;;  %v1537_v28 = vld [vmem:[#allocation7] sm:$0xff] }
 0x382   : > { %v609_v29 = vpop.f32.mrb[0].mxu1 }
 0x383   : > { %v765_v30 = vsel %vm761_vm3, %v609_v29, -1e+30  ;;  %v1804_v31 = vpop.f32.mrb[1].mxu1  ;;  %v1538_v29 = vld [vmem:[#allocation7 + $0x8] sm:$0xff] }
 0x384   : > { %v771_v32 = vsel %vm468_vm2, %v765_v30, -inf  ;;  %v2127_v31 = vmov 1983009808  }
 0x385   : > { %772 = vmax.xlane.f32.xlu0 %v771_v32  ;;  %v1387_v32 = vunpack.c.l.s4 %v2127_v31 }
 0x386   : > { %v681_v33 = vpop.f32.mrb[2].mxu1 }
 0x387   : > { %v766_v34 = vsel %vm761_vm3, %v681_v33, -1e+30  ;;  %v1809_v35 = vpop.f32.mrb[3].mxu1  ;;  %v2128_v33 = vmov 1934713408  }
 0x388   : > { %v774_v36 = vsel %vm468_vm2, %v766_v34, -inf  ;;  %v1388_v35 = vunpack.c.0.s8 %v1387_v32 }
 0x389   : > { %775 = vmax.xlane.f32.xlu1 %v774_v36 }
 0x38a   : > { %v753_v37 = vpop.f32.mrb[4].mxu0 }
 0x38b   : > { %v767_v38 = vsel %vm761_vm3, %v753_v37, -1e+30  ;;  %v1814_v39 = vpop.f32.mrb[5].mxu0 }
 0x38c   : > { %v777_v40 = vsel %vm468_vm2, %v767_v38, -inf  ;;  %v1391_v39 = vsub.s32 %v1388_v35, %v2375_v23 }
 0x38d   : > { %778 = vmax.xlane.f32.xlu1 %v777_v40 }
 0x39b   : > { %812 = vrot.lane.b32.xlu0 %v2352_v9, %s2126_s5 }
 0x39e   : > { %814 = vrot.lane.b32.xlu1 %v323_v11, %s2126_s5 }
 0x39f   : > { %818 = vrot.lane.b32.xlu0 %v327_v12, %s2126_s5 }
 0x3a2   : > { %816 = vrot.lane.b32.xlu1 %v325_v13, %s2126_s5 }
 0x3cc   : > { %v770_v41 = vpop.xlane.xlu1 %769 }
 0x3cd   : > { %v780_v42 = vsub.f32 %v764_v26, %v770_v41 }
 0x3cf   : > { %v784_v43 = vmul.f32 1.442695, %v780_v42 }
 0x3d1   : > { %1940 = vpow2.f32 %v784_v43 }
 0x3db   : > { %v1941_v44 = vpop.eup %1940 }
 0x3dc   : > { %v792_v45 = vsel %vm468_vm2, %v1941_v44, 0.0 }
 0x3dd   : > { %793 = vadd.xlane.f32.xlu1 %v792_v45 }
 0x412   : > { %v773_v46 = vpop.xlane.xlu0 %772 }
 0x413   : > { %v781_v47 = vsub.f32 %v765_v30, %v773_v46  ;;  %v1853_v30 = vpack.c.bf16 %v1538_v29, %v1537_v28 }
 0x415   : > { %v786_v48 = vmul.f32 1.442695, %v781_v47 }
 0x416   : > { %v776_v49 = vpop.xlane.xlu1 %775  ;;  %v813_v62 = vpop.permute.xlu0 %812 }
 0x417   : > { %1942 = vpow2.f32 %v786_v48  ;;  %v782_v50 = vsub.f32 %v766_v34, %v776_v49  ;;  %v1419_v34 = vunpack.c.l.s4 %v2128_v33 }
 0x419   : > { %v788_v51 = vmul.f32 1.442695, %v782_v50 }
 0x41a   : > { %v779_v52 = vpop.xlane.xlu1 %778  ;;  %v819_v2 = vpop.permute.xlu0 %818 }
 0x41b   : > { %1944 = vpow2.f32 %v788_v51  ;;  %v783_v53 = vsub.f32 %v767_v38, %v779_v52  ;;  %v1420_v38 = vunpack.c.0.s8 %v1419_v34 }
 0x41d   : > { %v790_v54 = vmul.f32 1.442695, %v783_v53  ;;  %v1423_v45 = vsub.s32 %v1420_v38, %v2375_v23  ;;  %v1539_v53 = vld [vmem:[#allocation7 + $0x10] sm:$0xff] }
 0x41e   : > { %v815_v61 = vpop.permute.xlu1 %814 }
 0x41f   : > { %1946 = vpow2.f32 %v790_v54  ;;  %v1540_v54 = vld [vmem:[#allocation7 + $0x18] sm:$0xff] }
 0x421   : > { %v1943_v55 = vpop.eup %1942 }
 0x422   : > { %v795_v56 = vsel %vm468_vm2, %v1943_v55, 0.0  ;;  %v817_v63 = vpop.permute.xlu1 %816 }
 0x423   : > { %796 = vadd.xlane.f32.xlu0 %v795_v56 }
 0x425   : > { %v1945_v57 = vpop.eup %1944 }
 0x426   : > { %v798_v58 = vsel %vm468_vm2, %v1945_v57, 0.0 }
 0x427   : > { %799 = vadd.xlane.f32.xlu0 %v798_v58 }
 0x429   : > { %v1947_v59 = vpop.eup %1946 }
 0x42a   : > { %v801_v60 = vsel %vm468_vm2, %v1947_v59, 0.0 }
 0x42b   : > { %802 = vadd.xlane.f32.xlu1 %v801_v60 }
 0x454   : > { %824 = vxpose.xlu0.b32.start.end [1/1] (short) (narrow) %v813_v62, 8 }
 0x458   : > { %888 = vxpose.xlu0.b32.start.end [1/1] (short) (narrow) %v817_v63, 8 }
 0x45c   : > { %920 = vxpose.xlu0.b32.start.end [1/1] (short) (narrow) %v819_v2, 8 }
 0x45e   : > { %856 = vxpose.xlu1.b32.start.end [1/1] (short) (narrow) %v815_v61, 8 }
 0x46a   : > { %v794_v3 = vpop.xlane.xlu1 %793 }
 0x46b   : > { %1948 = vrcp.f32 %v794_v3 }
 0x475   : > { %v1949_v4 = vpop.eup %1948 }
 0x476   : > { %v805_v5 = vmul.f32 %v1949_v4, %v1941_v44 }
 0x478   : > { %1816 = vmatpush3.xpose.msk.msra.mxu1 %vm468_vm2, %v805_v5 }
 0x479   : > { %1825 = vmatprep.subr.mxu1 %v2121_v1 }
 0x4b0   : > { %v797_v6 = vpop.xlane.xlu0 %796 }
 0x4b1   : > { %1950 = vrcp.f32 %v797_v6 }
 0x4b4   : > { %v800_v9 = vpop.xlane.xlu0 %799 }
 0x4b5   : > { %1952 = vrcp.f32 %v800_v9 }
 0x4b8   : > { %v803_v10 = vpop.xlane.xlu1 %802 }
 0x4b9   : > { %1954 = vrcp.f32 %v803_v10 }
 0x4bb   : > { %v1951_v7 = vpop.eup %1950 }
 0x4bc   : > { %v807_v8 = vmul.f32 %v1951_v7, %v1943_v55 }
 0x4be   : > { %1821 = vmatpush3.xpose.msk.msra.mxu0 %vm468_vm2, %v807_v8 }
 0x4bf   : > { %1830 = vmatprep.subr.mxu0 %v2121_v1  ;;  %v1953_v11 = vpop.eup %1952 }
 0x4c0   : > { %v809_v12 = vmul.f32 %v1953_v11, %v1945_v57 }
 0x4c3   : > { %v1955_v15 = vpop.eup %1954 }
 0x4c4   : > { %v811_v16 = vmul.f32 %v1955_v15, %v1947_v59  ;;  %v1856_v59 = vpack.c.bf16 %v1540_v54, %v1539_v53 }
 0x4d4   : > { %v840_v13 = vpop.trf.xlu0 }
 0x4d5   : > { %1818 = vmatmul.mubr.msk.f32.vlgmr.msra.gmra.mrb[4].mxu1 %vm468_vm2, %v840_v13 }
 0x4d6   : > { %1826 = vmatpush3.xpose.msk.msra.mxu1 %vm468_vm2, %v809_v12  ;;  %1827 = vmatprep.mubr.msk.f32.mxu1 %vm2120_vm0, %v2121_v1 }
 0x4d7   : > { %1852 = vmatprep.subr.bf16.mxu1 %v2119_v0 }
 0x4d8   : > { %v904_v14 = vpop.trf.xlu0 }
 0x4d9   : > { %1828 = vmatmul.mubr.msk.f32.vlgmr.msra.gmra.mrb[6].mxu1 %vm468_vm2, %v904_v14 }
 0x4da   : > { %1843 = vmatprep.mubr.msk.f32.mxu1 %vm2120_vm0, %v2121_v1  ;;  %1854 = vmatpush3.bf16.msra.mxu1 %v1853_v30 }
 0x4db   : > { %1855 = vmatprep.subr.bf16.mxu1 %v2119_v0 }
 0x4dc   : > { %v936_v18 = vpop.trf.xlu0 }
 0x4de   : > { %v872_v17 = vpop.trf.xlu1  ;;  %1857 = vmatpush3.bf16.msra.mxu1 %v1856_v59 }
 0x4df   : > { %1823 = vmatmul.mubr.msk.f32.vlgmr.msra.gmra.mrb[6].mxu0 %vm468_vm2, %v872_v17 }
 0x4e0   : > { %1831 = vmatpush3.xpose.msk.msra.mxu0 %vm468_vm2, %v811_v16  ;;  %1832 = vmatprep.mubr.msk.f32.mxu0 %vm2120_vm0, %v2121_v1 }
 0x4e3   : > { %1833 = vmatmul.mubr.msk.f32.vlgmr.msra.gmra.mrb[8].mxu0 %vm468_vm2, %v936_v18 }
 0x5a8   : > { %v1024_v19 = vpop.f32.mrb[4].mxu1 }
 0x5a9   : > { %v1819_v20 = vpop.f32.mrb[5].mxu1  ;;  %1256 = vxpose.xlu1.b32.start.end [1/1] (short) (narrow) %v1024_v19, 8 }
 0x5ac   : > { %v1176_v21 = vpop.f32.mrb[6].mxu1 }
 0x5ad   : > { %v1829_v22 = vpop.f32.mrb[7].mxu1  ;;  %1320 = vxpose.xlu1.b32.start.end [1/1] (short) (narrow) %v1176_v21, 8 }
 0x5b2   : > { %v1100_v24 = vpop.f32.mrb[6].mxu0 }
 0x5b3   : > { %1288 = vxpose.xlu0.b32.start.end [1/1] (short) (narrow) %v1100_v24, 8  ;;  %v1824_v25 = vpop.f32.mrb[7].mxu0  ;;  %v1752_v24 = vld [vmem:[%s2474_s3] ss:$0 sm:$0xff] }
 0x5b6   : > { %v1252_v26 = vpop.f32.mrb[8].mxu0 }
 0x5b7   : > { %1352 = vxpose.xlu0.b32.start.end [1/1] (short) (narrow) %v1252_v26, 8  ;;  %v1834_v27 = vpop.f32.mrb[9].mxu0 }
 0x629   : > { %v1272_v1 = vpop.trf.xlu1 }
 0x62d   : > { %v1336_v37 = vpop.trf.xlu1 }
 0x62e   : > { %v1384_v40 = vcombine.low %v1272_v1, %v1336_v37  ;;  %v1385_v41 = vcombine.high %v1272_v1, %v1336_v37 }
 0x630   : > { %v1392_v46 = vrot.slane %v1384_v40, %v1391_v39  ;;  %v1399_v0 = vrot.slane %v1385_v41, %v1391_v39 }
 0x633   : > { %v1304_v36 = vpop.trf.xlu0 }
 0x637   : > { %v1368_v42 = vpop.trf.xlu0 }
 0x638   : > { %v1400_v43 = vcombine.low %v1304_v36, %v1368_v42  ;;  %v1401_v44 = vcombine.high %v1304_v36, %v1368_v42 }
 0x63a   : > { %v1408_v47 = vrot.slane %v1400_v43, %v1391_v39  ;;  %v1415_v48 = vrot.slane %v1401_v44, %v1391_v39 }
 0x63c   : > { %v1416_v49 = vcombine.low %v1392_v46, %v1408_v47  ;;  %v1417_v50 = vcombine.high %v1392_v46, %v1408_v47  ;;  %v1432_v51 = vcombine.low %v1399_v0, %v1415_v48  ;;  %v1433_v52 = vcombine.high %v1399_v0, %v1415_v48 }
 0x63e   : > { %v1424_v55 = vrot.slane %v1416_v49, %v1423_v45  ;;  %v1431_v56 = vrot.slane %v1417_v50, %v1423_v45  ;;  %v1440_v57 = vrot.slane %v1432_v51, %v1423_v45  ;;  %v1447_v58 = vrot.slane %v1433_v52, %v1423_v45 }
 0x640   : > { %v1452_v60 = vcombine.low %v1424_v55, %v1431_v56  ;;  %v1750_v61 = vcombine.high %v1424_v55, %v1431_v56  ;;  %v1468_v62 = vcombine.low %v1440_v57, %v1447_v58  ;;  %v1751_v63 = vcombine.high %v1440_v57, %v1447_v58 }
 0x642   : > { %v1459_v23 = vrot.slane %v1452_v60, %v1391_v39  ;;  %v1467_v2 = vrot.slane %v1750_v61, %v1391_v39  ;;  %v1475_v3 = vrot.slane %v1468_v62, %v1391_v39  ;;  %v1483_v4 = vrot.slane %v1751_v63, %v1391_v39 }
 0x644   : > { %v1485_v5 = vcombine.high %v1459_v23, %v1467_v2  ;;  %v1501_v6 = vcombine.high %v1475_v3, %v1483_v4  ;;  %v1484_v7 = vcombine.low %v1459_v23, %v1467_v2  ;;  %v1500_v8 = vcombine.low %v1475_v3, %v1483_v4 }
 0x646   : > { %v1499_v9 = vrot.slane %v1485_v5, %v1423_v45  ;;  %v1515_v10 = vrot.slane %v1501_v6, %v1423_v45  ;;  %v1492_v11 = vrot.slane %v1484_v7, %v1423_v45  ;;  %v1508_v12 = vrot.slane %v1500_v8, %v1423_v45 }
 0x648   : > { %v1518_v13 = vcombine.low %v1499_v9, %v1515_v10  ;;  %v1517_v14 = vcombine.high %v1492_v11, %v1508_v12  ;;  %v1516_v15 = vcombine.low %v1492_v11, %v1508_v12  ;;  %v1519_v16 = vcombine.high %v1499_v9, %v1515_v10 }
 0x64a   : > { %1525 = vrot.lane.b32.xlu0 %v1518_v13, %s2129_s6  ;;  %1521 = vrot.lane.b32.xlu1 %v1517_v14, %s2130_s26 }
 0x64e   : > { %1529 = vrot.lane.b32.xlu1 %v1519_v16, %s2131_s10 }
 0x6bc   : > { %v1522_v17 = vpop.permute.xlu1 %1521  ;;  %v1526_v18 = vpop.permute.xlu0 %1525 }
 0x6bd   : > { %v1532_v19 = vsel %vm468_vm2, %v1516_v15, %v1522_v17 }
 0x6be   : > { %v1534_v21 = vsel %vm1533_vm4, %v1532_v19, %v1526_v18 }
 0x6c0   : > { %v1530_v20 = vpop.permute.xlu1 %1529 }
 0x6c1   : > { %v1536_v22 = vsel %vm1535_vm5, %v1534_v21, %v1530_v20 }
 0x6c2   : > { %1844 = vmatmul.mubr.msk.f32.vlgmr.msra.gmra.mrb[8].mxu1 %vm247_vm1, %v1536_v22 }
 0x795   : > { %v1617_v25 = vpop.f32.mrb[8].mxu1 }
 0x796   : > { %v1618_v26 = vadd.f32 %v1752_v24, %v1617_v25  ;;  %v1845_v27 = vpop.f32.mrb[9].mxu1 }
 0x798   : > { %1621 = vst.msk [vmem:[%s241_s11] sm:$0xff] %vm247_vm1, %v1618_v26 }
 0x799   : > { %2055 = shalt.err (!%p2052_p2)
}
 0x79a   : > { %s2056_s29 = scalar_lea.hbm %s2426_s21, 128  ;;  %s2060_s26 = scalar_lea.hbm %s2475_s4, 256 }
 0x79b   : > { %p2057_p13 = scmp.ne.s32.totalorder %s2426_s21, %s2056_s29  ;;  %p2061_p4 = scmp.lt.u32.totalorder %s2426_s21, %s2475_s4 }
 0x79c   : > { %p2062_p5 = scmp.lt.u32.totalorder %s2060_s26, %s2056_s29  ;;  %p2064_p11 = scmp.lt.u32.totalorder %s2056_s29, %s2426_s21 }
 0x79d   : > { %p2058_p6 = pnand %p2057_p13, %p2489_p0 }
 0x79e   : > { %p2063_p8 = por %p2062_p5, %p2061_p4 }
 0x79f   : > { %p2059_p10 = pneg %p2058_p6 }
 0x7a0   : > { %p2065_p1 = por %p2064_p11, %p2063_p8 }
 0x7a2   : > { %p2066_p3 = pnand %p2065_p1, %p2059_p10 }
 0x7a4   : > { %2069 = shalt.err (!%p2066_p3)
}
 0x7a5   : > { %1868 = dma.vmem_to_hbm [thread:$0]  (%p2489_p0), %s2428_s12, 128, %s2426_s21, %s1623_s23  }
 0x7a6 PF: > { %s1648_s20 = sand.u32 1, %s2100_s15   ;;  %p2490_p7 = scmp.ne.s32.totalorder %s2480_s22, 0 }
 0x7a7   : > { %p2491_p9 = scmp.ge.s32.totalorder %s2112_s18, 2  ;;  %s1649_s28 = scalar_lea.sflag [#allocation4], %s1648_s20 }
 0x7a9   : > { %p1882_p12 = pnand %p2491_p9, %p2490_p7 }
 0x7ab   : > { %2095 = dma.done.wait (!%p1882_p12), %s1649_s28, 128  }
 0x7ac   : > { %2097 = vsyncadd (!%p1882_p12), %s1649_s28, 4294967168  ;;  %p18_p2 = scmp.ge.s32.totalorder %s2268_s9, 4   ;;  %s2492_s15 = smov %s2104_s16 }
 0x7ad   : > { %s2493_s16 = smov %s2108_s17  ;;  %s2494_s17 = smov %s2284_s14 }
 0x7ae   : > { %s2495_s18 = smov %s2268_s9  ;;  %20 = sbr.rel (!%p18_p2) target bundleno = 6 (0x6), region = 89 }
 0x7b5   :  { %1654 = vsyncpa [#allocation3], 1 }
 0x7b6   :  { %1656 = vsyncpa [#allocation3 + $0x1], 1 }
 0x7b7   :  { %1657 = vsyncpa [#allocation6], 1 }
 0x7b8   :  { %1658 = vsyncpa [#allocation4], 1 }
 0x7b9   :  { %1660 = vsyncpa [#allocation4 + $0x1], 1 }

</bundles_post_ra>
